<compile_context>
chip_gen: v5e
topology: v5e:2x2
jax: 0.10.0
libtpu: 0.0.40
codegen_flags: <defaults>
</compile_context>

<pallas_src>
import functools

import jax
import jax.numpy as jnp
from jax.experimental import pallas as pl
from jax.experimental.pallas import tpu as pltpu

# ImageNet preprocessing constants (load_imagenet_preprocess equivalent).
_IMAGENET_MEAN = (0.485, 0.456, 0.406)
_IMAGENET_STD = (0.229, 0.224, 0.225)

_MiB = 1024 * 1024


def _round_up(x, m):
    return ((x + m - 1) // m) * m


def _vmem_capacity_bytes():
    """Per-core VMEM capacity (v5e/v6e: 128 MiB, v7x: 64 MiB) with fallback."""
    try:
        return int(pltpu.get_tpu_info().vmem_capacity_bytes)
    except Exception:
        return 64 * _MiB  # conservative: safe on every generation


def _vmem_budget_bytes():
    # Leave ~30% headroom for compiler-internal scratch; never request >96 MiB.
    return int(min(_vmem_capacity_bytes() * 0.7, 96 * _MiB))


def _tile_vmem_bytes(tb, tk, npad):
    """Explicit VMEM bytes for one tile configuration (double-buffered I/O)."""
    x_tile = tb * tk * 2          # bf16 activations
    w_tile = tk * npad * 2        # bf16 folded weights
    b_tile = npad * 4             # f32 folded bias
    conf_tile = tb * npad * 4     # f32 confidences
    idx_tile = tb * 128 * 4       # argmax index (lane-padded)
    acc = tb * npad * 4           # f32 accumulator scratch (single buffer)
    return 2 * (x_tile + w_tile + b_tile + conf_tile + idx_tile) + acc


def _select_tiles(B, D, npad, budget):
    """Pick (tb, tk) fitting the VMEM budget; prefer 1 K-step and large tb."""
    if B <= 128:
        tb_candidates = [_round_up(max(B, 1), 8)]
    else:
        bpad128 = _round_up(B, 128)
        tb_candidates = [t for t in (512, 256, 128) if t <= bpad128]
    # Prefer a single K step (tk == D); otherwise largest lane-aligned divisor.
    tk_candidates = [D] + [t for t in (2048, 1024, 512, 256, 128)
                           if t < D and D % t == 0]
    for tb in tb_candidates:
        for tk in tk_candidates:
            if _tile_vmem_bytes(tb, tk, npad) <= budget:
                return tb, tk
    # Fallback: smallest candidates (only reachable for extreme shapes).
    return tb_candidates[-1], tk_candidates[-1]


def _classifier_kernel(x_ref, w_ref, b_ref, conf_ref, idx_ref, acc_ref):
    """K-tiled logits accumulation; bias + argmax + softmax epilogue at k==last."""
    k = pl.program_id(1)

    @pl.when(k == 0)
    def _():
        acc_ref[...] = jnp.zeros_like(acc_ref)

    # bf16 x bf16 MXU matmul with f32 accumulation (both operands pre-cast).
    acc_ref[...] += jnp.dot(x_ref[...], w_ref[...],
                            preferred_element_type=jnp.float32)

    @pl.when(k == pl.num_programs(1) - 1)
    def _():
        logits = acc_ref[...] + b_ref[...]                  # [tb, Npad] f32
        npad = logits.shape[-1]
        # argmax from logits (softmax is monotone) -> no dependence on exp/div.
        mx = jnp.max(logits, axis=-1, keepdims=True)
        iota = jax.lax.broadcasted_iota(jnp.int32, logits.shape, 1)
        idx_ref[...] = jnp.min(jnp.where(logits == mx, iota, npad),
                               axis=-1, keepdims=True)
        # softmax over the padded (lane-dense) class axis; padded classes have
        # bias -1e30 so they contribute exp(...) == 0.  Reciprocal + multiply
        # instead of a broadcast divide (EUP slot, exact form keeps 1e-5 tol).
        e = jnp.exp(logits - mx)
        s = jnp.sum(e, axis=-1, keepdims=True)
        conf_ref[...] = e * pl.reciprocal(s, approx=False)


@functools.partial(jax.jit, static_argnames=("tb", "tk", "vmem_limit"))
def _run_kernel(x_pad, w_fold, b_fold, *, tb, tk, vmem_limit):
    bp, d = x_pad.shape
    npad = w_fold.shape[1]
    grid = (bp // tb, d // tk)
    conf, idx = pl.pallas_call(
        _classifier_kernel,
        out_shape=(
            jax.ShapeDtypeStruct((bp, npad), jnp.float32),
            jax.ShapeDtypeStruct((bp, 1), jnp.int32),
        ),
        grid_spec=pltpu.PrefetchScalarGridSpec(
            num_scalar_prefetch=0,
            grid=grid,
            in_specs=[
                pl.BlockSpec((tb, tk), lambda i, k: (i, k)),    # bf16 activations
                pl.BlockSpec((tk, npad), lambda i, k: (k, 0)),  # bf16 weights
                pl.BlockSpec((1, npad), lambda i, k: (0, 0)),   # folded f32 bias
            ],
            out_specs=[
                pl.BlockSpec((tb, npad), lambda i, k: (i, 0)),  # conf (lane-dense)
                pl.BlockSpec((tb, 1), lambda i, k: (i, 0)),     # argmax index
            ],
            scratch_shapes=[pltpu.VMEM((tb, npad), jnp.float32)],
        ),
        compiler_params=pltpu.CompilerParams(
            dimension_semantics=("parallel", "arbitrary"),
            vmem_limit_bytes=vmem_limit,
        ),
    )(x_pad, w_fold, b_fold)
    return conf, idx


class BaseClassifierPallas:
    """JAX/Pallas port of BaseClassifier with a synthetic linear `model`."""
    # TODO(synk): the wrapped torch `model` is unspecified in the spec; it is
    # synthesized here as a deterministic linear classifier.

    def __init__(self, in_channels, height, width, num_classes, key):
        self.C, self.H, self.W = in_channels, height, width
        self.N = num_classes
        D = in_channels * height * width
        self.D = D

        # Deterministic synthetic model parameters (linear classifier).
        kw, kb = jax.random.split(key)
        w = jax.random.normal(kw, (D, num_classes), jnp.float32) / jnp.sqrt(D)
        b = jax.random.normal(kb, (1, num_classes), jnp.float32) * 0.01

        # Flattened per-channel ImageNet normalization constants.
        mean_c = jnp.asarray(_IMAGENET_MEAN[:in_channels], jnp.float32)
        std_c = jnp.asarray(_IMAGENET_STD[:in_channels], jnp.float32)
        hw = height * width
        mean_flat = jnp.repeat(mean_c, hw).reshape(1, D)
        stdinv_flat = (1.0 / jnp.repeat(std_c, hw)).reshape(1, D)

        # Fold normalization into the linear layer (f32 algebra, exact):
        #   ((x - mean)*stdinv) @ W + b == x @ (stdinv[:,None]*W)
        #                                  + (b - (mean*stdinv) @ W)
        w_folded = stdinv_flat.reshape(D, 1) * w
        b_folded = b - (mean_flat * stdinv_flat) @ w

        # Pad the class dim to a multiple of 128 (lane-dense); dummy classes
        # get zero weights and a -1e30 bias so softmax/argmax ignore them.
        # TODO(synk): on v7x, fp8(e4m3) weights with per-column scales would
        # halve weight HBM bytes; skipped pending accuracy validation.
        npad = _round_up(num_classes, 128)
        w_pad = jnp.zeros((D, npad), jnp.float32).at[:, :num_classes].set(w_folded)
        b_pad = jnp.full((1, npad), -1e30, jnp.float32).at[:, :num_classes].set(b_folded)
        self.w_fold = w_pad.astype(jnp.bfloat16)   # bf16 weights for the MXU
        self.b_fold = b_pad                        # keep bias in f32
        self.Npad = npad

        # Unfolded params kept only for reference checking.
        self._w_raw, self._b_raw = w, b
        self._mean_flat, self._stdinv_flat = mean_flat, stdinv_flat

    def _confidences(self, x):
        # x: NCHW [B, C, H, W] -> flatten to [B, D]; cast to bf16 host-side so
        # the kernel DMAs half the activation bytes and skips the VPU cast.
        B = x.shape[0]
        x_flat = jnp.asarray(x).reshape(B, -1).astype(jnp.bfloat16)
        budget = _vmem_budget_bytes()
        tb, tk = _select_tiles(B, self.D, self.Npad, budget)
        bpad = _round_up(B, tb)
        if bpad != B:
            x_flat = jnp.pad(x_flat, ((0, bpad - B), (0, 0)))
        conf, idx = _run_kernel(x_flat, self.w_fold, self.b_fold,
                                tb=tb, tk=tk, vmem_limit=budget)
        return conf[:B, :self.N], idx[:B, 0]

    def forward(self, x, y=None, tr=True):
        conf, idx = self._confidences(x)
        if y is None:
            return idx                               # conf.max(dim=1)[1]
        elif tr:
            # Mirrors the original torch semantics exactly: conf[:, y].
            return -jnp.log(conf[:, y] + 1e-12).mean()
        else:
            return -jnp.log(1.0 - conf[:, y] + 1e-12).mean()

    def top_five(self, x):
        conf, _ = self._confidences(x)
        return jax.lax.top_k(conf, 5)

    __call__ = forward


if __name__ == "__main__":
    B, C, H, W = 2, 3, 16, 16
    NUM_CLASSES = 32

    key = jax.random.PRNGKey(0)
    k_param, k_x = jax.random.split(key)

    clf = BaseClassifierPallas(C, H, W, NUM_CLASSES, k_param)

    # Images in [0, 1] like torchvision tensors before normalization.
    x = jax.random.uniform(k_x, (B, C, H, W), jnp.float32)

    idx = clf(x)                         # inference path (y is None)
    loss_tr = clf(x, y=3, tr=True)       # training loss path
    loss_neg = clf(x, y=3, tr=False)     # negative-target loss path
    top5_vals, top5_idx = clf.top_five(x)
    jax.block_until_ready((idx, loss_tr, loss_neg, top5_vals, top5_idx))

    conf_kernel, idx_kernel = clf._confidences(x)

    # Tight check: identical folded-bf16 math in plain JAX.
    xf = x.reshape(B, -1).astype(jnp.float32)
    logits_fold = (jnp.dot(xf.astype(jnp.bfloat16), clf.w_fold,
                           preferred_element_type=jnp.float32) + clf.b_fold)
    conf_fold = jax.nn.softmax(logits_fold, axis=-1)[:, :NUM_CLASSES]
    assert jnp.allclose(conf_kernel, conf_fold, atol=1e-5, rtol=1e-5)
    assert jnp.array_equal(idx_kernel, jnp.argmax(conf_fold, axis=-1))
    assert jnp.array_equal(idx, idx_kernel)

    # Loose semantic check vs. the original unfolded f32 pipeline
    # (difference is only bf16 round-off of the folded weights/activations).
    xn = (xf - clf._mean_flat) * clf._stdinv_flat
    conf_f32 = jax.nn.softmax(xn @ clf._w_raw + clf._b_raw, axis=-1)
    assert jnp.allclose(conf_kernel, conf_f32, atol=1e-2)

    print("KERNEL_OK")
</pallas_src>

<mosaic_0001>
module attributes {stable_mosaic.version = 11 : i64} {
  func.func @_classifier_kernel(%arg0: i32, %arg1: i32, %arg2: memref<8x768xbf16, #tpu.memory_space<vmem>>, %arg3: memref<768x128xbf16, #tpu.memory_space<vmem>>, %arg4: memref<1x128xf32, #tpu.memory_space<vmem>>, %arg5: memref<8x128xf32, #tpu.memory_space<vmem>>, %arg6: memref<8x1xi32, #tpu.memory_space<vmem>>, %arg7: memref<8x128xf32, #tpu.memory_space<vmem>>) attributes {dimension_semantics = [#tpu.dimension_semantics<parallel>, #tpu.dimension_semantics<arbitrary>], iteration_bounds = array<i64: 1, 1>, scalar_prefetch = 0 : i64, scratch_operands = 1 : i64, tpu.core_type = #tpu.core_type<tc>, window_params = [{transform_indices = @transform_0, window_bounds = array<i64: 8, 768>}, {transform_indices = @transform_1, window_bounds = array<i64: 768, 128>}, {pipeline_mode = #tpu.pipeline_mode<synchronous>, transform_indices = @transform_2, window_bounds = array<i64: 1, 128>}, {transform_indices = @transform_3, window_bounds = array<i64: 8, 128>}, {transform_indices = @transform_4, window_bounds = array<i64: 8, 1>}]} {
    %c0_i32 = arith.constant 0 : i32
    %0 = arith.cmpi eq, %arg1, %c0_i32 : i32
    %1 = arith.extui %0 : i1 to i32
    %c0_i32_0 = arith.constant 0 : i32
    %2 = arith.cmpi ne, %1, %c0_i32_0 : i32
    scf.if %2 {
      %cst_10 = arith.constant 0.000000e+00 : f32
      %12 = vector.broadcast %cst_10 : f32 to vector<8x128xf32>
      %c0_11 = arith.constant 0 : index
      %c0_12 = arith.constant 0 : index
      %13 = vector.load %arg7[%c0_11, %c0_12] : memref<8x128xf32, #tpu.memory_space<vmem>>, vector<8x128xf32>
      tpu.vector_store %arg7[%c0_11, %c0_12], %12 {strides = array<i32>} : memref<8x128xf32, #tpu.memory_space<vmem>>, vector<8x128xf32>,
    } else {
    }
    %c0 = arith.constant 0 : index
    %c0_1 = arith.constant 0 : index
    %3 = vector.load %arg7[%c0, %c0_1] : memref<8x128xf32, #tpu.memory_space<vmem>>, vector<8x128xf32>
    %c0_2 = arith.constant 0 : index
    %c0_3 = arith.constant 0 : index
    %4 = vector.load %arg2[%c0_2, %c0_3] : memref<8x768xbf16, #tpu.memory_space<vmem>>, vector<8x768xbf16>
    %c0_4 = arith.constant 0 : index
    %c0_5 = arith.constant 0 : index
    %5 = vector.load %arg3[%c0_4, %c0_5] : memref<768x128xbf16, #tpu.memory_space<vmem>>, vector<768x128xbf16>
    %cst = arith.constant dense<0.000000e+00> : vector<8x128xf32>
    %6 = tpu.matmul %4, %5, %cst {dimension_numbers = #tpu.dot_dimension_numbers<[1], [0], [0], [1], [0, 0, 1, 1], [], []>} : vector<8x768xbf16>, vector<768x128xbf16>, vector<8x128xf32> -> vector<8x128xf32>
    %7 = arith.addf %3, %6 : vector<8x128xf32>
    %c0_6 = arith.constant 0 : index
    %c0_7 = arith.constant 0 : index
    %8 = vector.load %arg7[%c0_6, %c0_7] : memref<8x128xf32, #tpu.memory_space<vmem>>, vector<8x128xf32>
    tpu.vector_store %arg7[%c0_6, %c0_7], %7 {strides = array<i32>} : memref<8x128xf32, #tpu.memory_space<vmem>>, vector<8x128xf32>,
    %c0_i32_8 = arith.constant 0 : i32
    %9 = arith.cmpi eq, %arg1, %c0_i32_8 : i32
    %10 = arith.extui %9 : i1 to i32
    %c0_i32_9 = arith.constant 0 : i32
    %11 = arith.cmpi ne, %10, %c0_i32_9 : i32
    scf.if %11 {
      %c0_10 = arith.constant 0 : index
      %c0_11 = arith.constant 0 : index
      %12 = vector.load %arg7[%c0_10, %c0_11] : memref<8x128xf32, #tpu.memory_space<vmem>>, vector<8x128xf32>
      %c0_12 = arith.constant 0 : index
      %c0_13 = arith.constant 0 : index
      %13 = vector.load %arg4[%c0_12, %c0_13] : memref<1x128xf32, #tpu.memory_space<vmem>>, vector<1x128xf32>
      %14 = vector.broadcast %13 : vector<1x128xf32> to vector<8x128xf32>
      %15 = arith.addf %12, %14 : vector<8x128xf32>
      %cst_14 = arith.constant dense<0xFF800000> : vector<8xf32>
      %16 = vector.multi_reduction <maximumf>, %15, %cst_14 [1] : vector<8x128xf32> to vector<8xf32>
      %17 = vector.shape_cast %16 : vector<8xf32> to vector<8x1xf32>
      %18 = tpu.iota {dimensions = array<i32: 1>} : vector<8x128xi32>
      %19 = vector.broadcast %17 : vector<8x1xf32> to vector<8x128xf32>
      %20 = arith.cmpf oeq, %15, %19 : vector<8x128xf32>
      %c128_i32 = arith.constant 128 : i32
      %21 = vector.broadcast %c128_i32 : i32 to vector<8x128xi32>
      %22 = arith.select %20, %18, %21 : vector<8x128xi1>, vector<8x128xi32>
      %cst_15 = arith.constant dense<2147483647> : vector<8xi32>
      %23 = vector.multi_reduction <minsi>, %22, %cst_15 [1] : vector<8x128xi32> to vector<8xi32>
      %24 = vector.shape_cast %23 : vector<8xi32> to vector<8x1xi32>
      %c0_16 = arith.constant 0 : index
      %c0_17 = arith.constant 0 : index
      %25 = vector.load %arg6[%c0_16, %c0_17] : memref<8x1xi32, #tpu.memory_space<vmem>>, vector<8x1xi32>
      tpu.vector_store %arg6[%c0_16, %c0_17], %24 {strides = array<i32>} : memref<8x1xi32, #tpu.memory_space<vmem>>, vector<8x1xi32>,
      %26 = vector.broadcast %17 : vector<8x1xf32> to vector<8x128xf32>
      %27 = arith.subf %15, %26 : vector<8x128xf32>
      %28 = math.exp %27 : vector<8x128xf32>
      %cst_18 = arith.constant dense<0.000000e+00> : vector<8xf32>
      %29 = vector.multi_reduction <add>, %28, %cst_18 [1] : vector<8x128xf32> to vector<8xf32>
      %30 = vector.shape_cast %29 : vector<8xf32> to vector<8x1xf32>
      %31 = tpu.reciprocal %30 : vector<8x1xf32> -> vector<8x1xf32>
      %32 = vector.broadcast %31 : vector<8x1xf32> to vector<8x128xf32>
      %33 = arith.mulf %28, %32 : vector<8x128xf32>
      %c0_19 = arith.constant 0 : index
      %c0_20 = arith.constant 0 : index
      %34 = vector.load %arg5[%c0_19, %c0_20] : memref<8x128xf32, #tpu.memory_space<vmem>>, vector<8x128xf32>
      tpu.vector_store %arg5[%c0_19, %c0_20], %33 {strides = array<i32>} : memref<8x128xf32, #tpu.memory_space<vmem>>, vector<8x128xf32>,
    } else {
    }
    return
  }
  func.func @transform_0(%arg0: i32, %arg1: i32) -> (i32, i32) {
    %c0_i32 = arith.constant 0 : i32
    return %arg0, %arg1 : i32, i32
  }
  func.func @transform_1(%arg0: i32, %arg1: i32) -> (i32, i32) {
    %c0_i32 = arith.constant 0 : i32
    %c0_i32_0 = arith.constant 0 : i32
    return %arg1, %c0_i32 : i32, i32
  }
  func.func @transform_2(%arg0: i32, %arg1: i32) -> (i32, i32) {
    %c0_i32 = arith.constant 0 : i32
    %c0_i32_0 = arith.constant 0 : i32
    %c0_i32_1 = arith.constant 0 : i32
    return %c0_i32, %c0_i32_0 : i32, i32
  }
  func.func @transform_3(%arg0: i32, %arg1: i32) -> (i32, i32) {
    %c0_i32 = arith.constant 0 : i32
    %c0_i32_0 = arith.constant 0 : i32
    return %arg0, %c0_i32 : i32, i32
  }
  func.func @transform_4(%arg0: i32, %arg1: i32) -> (i32, i32) {
    %c0_i32 = arith.constant 0 : i32
    %c0_i32_0 = arith.constant 0 : i32
    return %arg0, %c0_i32 : i32, i32
  }
}

</mosaic_0001>

<bundles_post_ra>
// kernel: _run_kernel.1
= control target key start
LH: loop header
LB: loop body
LE: loop exit
PB: predicated region body
PF: predicated region fallthrough
CT: control target
= control target key end

     0   :  { %10 = vsyncpa [#allocation4], 0  ;;  %s988_s0 = inlined_call_operand.hbm [shape: bf16[8,768], index: 0, kind: input, shape index: {}]   ;;  %s989_s1 = inlined_call_operand.hbm [shape: bf16[768,128], index: 1, kind: input, shape index: {}]   ;;  %s990_s2 = inlined_call_operand.vmem [shape: f32[1,128], index: 2, kind: input, shape index: {}]   ;;  %s991_s3 = inlined_call_operand.hbm [shape: f32[8,128], index: 3, kind: output, shape index: {0}]   ;;  %s992_s4 = inlined_call_operand.vmem [shape: s32[8,1], index: 4, kind: output, shape index: {1}]  }
   0x1   :  { %11 = vsyncpa [#allocation7], 0 }
   0x2   :  { %12 = vsyncpa [#allocation5], 0  ;;  %s18_s17 = sshll.u32 %s988_s0, 4  ;;  %s943_s18 = smov [#allocation3]   ;;  %s19_s17 = int_to_ptr.hbm [resolvable:$true] %s18_s17 }
   0x3   :  { %s20_s19 = sshll.u32 %s943_s18, 4  ;;  %s28_s22 = sshll.u32 %s989_s1, 4  ;;  %s21_s19 = int_to_ptr.vmem [resolvable:$true] %s20_s19  ;;  %s29_s22 = int_to_ptr.hbm [resolvable:$true] %s28_s22 }
   0x4   :  { %23 = dma.hbm_to_vmem [thread:$0]  %s19_s17, 384, %s21_s19, [#allocation4]  }
   0x5   :  { %s944_s23 = smov [#allocation6]   ;;  %s945_s25 = smov 64  }
   0x6   :  { %s30_s24 = sshll.u32 %s944_s23, 4  ;;  %s946_s26 = smov 4   ;;  %s31_s24 = int_to_ptr.vmem [resolvable:$true] %s30_s24 }
   0x7   :  { %36 = dma.hbm_to_vmem [thread:$0]  %s29_s22, 6144, %s31_s24, [#allocation7], %s945_s25, %s945_s25, %s946_s26  }
   0x8   :  { %937 = dma.done.wait [#allocation4], 384  }
   0x9   :  { %938 = vsyncadd [#allocation4], 4294966912 }
   0xa   :  { %939 = dma.done.wait [#allocation7], 6144  }
   0xb   :  { %940 = vsyncadd [#allocation7], 4294961152  ;;  %v814_v0 = vld [vmem:[#allocation6 + $0x38] sm:$0xff]  ;;  %v813_v2 = vld [vmem:[#allocation6 + $0x30] sm:$0xff]  ;;  %s600_s30 = sshll.u32 %s991_s3, 4  ;;  %vm570_vm6 = vcmask 7168   ;;  %s601_s30 = int_to_ptr.hbm [resolvable:$true] %s600_s30 }
   0xc   :  { %v822_v1 = vld [vmem:[#allocation6 + $0x78] sm:$0xff]  ;;  %461 = vmatpush.bf16.msra.mxu0 %v814_v0  ;;  %v821_v3 = vld [vmem:[#allocation6 + $0x70] sm:$0xff]  ;;  %v812_v8 = vld [vmem:[#allocation6 + $0x28] sm:$0xff] }
   0xd   :  { %474 = vmatpush.bf16.msra.mxu1 %v822_v1  ;;  %v830_v4 = vld [vmem:[#allocation6 + $0xb8] sm:$0xff]  ;;  %v829_v6 = vld [vmem:[#allocation6 + $0xb0] sm:$0xff]  ;;  %v820_v9 = vld [vmem:[#allocation6 + $0x68] sm:$0xff] }
   0xe   :  { %v838_v5 = vld [vmem:[#allocation6 + $0xf8] sm:$0xff]  ;;  %487 = vmatpush.bf16.msra.mxu2 %v830_v4  ;;  %v837_v7 = vld [vmem:[#allocation6 + $0xf0] sm:$0xff]  ;;  %v828_v10 = vld [vmem:[#allocation6 + $0xa8] sm:$0xff] }
   0xf   :  { %500 = vmatpush.bf16.msra.mxu3 %v838_v5  ;;  %v836_v11 = vld [vmem:[#allocation6 + $0xe8] sm:$0xff]  ;;  %v811_v12 = vld [vmem:[#allocation6 + $0x20] sm:$0xff]  ;;  %v810_v16 = vld [vmem:[#allocation6 + $0x18] sm:$0xff] }
  0x10   :  { %462 = vmatpush.bf16.msra.mxu0 %v813_v2  ;;  %v819_v13 = vld [vmem:[#allocation6 + $0x60] sm:$0xff]  ;;  %v818_v17 = vld [vmem:[#allocation6 + $0x58] sm:$0xff]  ;;  %v809_v20 = vld [vmem:[#allocation6 + $0x10] sm:$0xff] }
  0x11   :  { %475 = vmatpush.bf16.msra.mxu1 %v821_v3  ;;  %v827_v14 = vld [vmem:[#allocation6 + $0xa0] sm:$0xff]  ;;  %v826_v18 = vld [vmem:[#allocation6 + $0x98] sm:$0xff]  ;;  %v817_v21 = vld [vmem:[#allocation6 + $0x50] sm:$0xff] }
  0x12   :  { %488 = vmatpush.bf16.msra.mxu2 %v829_v6  ;;  %v835_v15 = vld [vmem:[#allocation6 + $0xe0] sm:$0xff]  ;;  %v834_v19 = vld [vmem:[#allocation6 + $0xd8] sm:$0xff]  ;;  %v825_v22 = vld [vmem:[#allocation6 + $0x90] sm:$0xff] }
  0x13   :  { %501 = vmatpush.bf16.msra.mxu3 %v837_v7  ;;  %v833_v23 = vld [vmem:[#allocation6 + $0xd0] sm:$0xff]  ;;  %v808_v24 = vld [vmem:[#allocation6 + $0x8] sm:$0xff]  ;;  %v807_v32 = vld [vmem:[#allocation6] sm:$0xff] }
  0x14   :  { %463 = vmatpush.bf16.msra.mxu0 %v812_v8  ;;  %v816_v25 = vld [vmem:[#allocation6 + $0x48] sm:$0xff]  ;;  %v54_v31 = vld [vmem:[#allocation3 + $0x8] sm:$0xff]  ;;  %v815_v33 = vld [vmem:[#allocation6 + $0x40] sm:$0xff] }
  0x15   :  { %476 = vmatpush.bf16.msra.mxu1 %v820_v9  ;;  %v53_v26 = vld [vmem:[#allocation3] sm:$0xff]  ;;  %v846_v34 = vld [vmem:[#allocation6 + $0x138] sm:$0xff]  ;;  %v823_v36 = vld [vmem:[#allocation6 + $0x80] sm:$0xff]  ;;  %v157_v38 = vunpack.c.l.b16 %v54_v31  ;;  %v158_v39 = vunpack.c.h.b16 %v54_v31 }
  0x16   :  { %489 = vmatpush.bf16.msra.mxu2 %v828_v10  ;;  %v824_v27 = vld [vmem:[#allocation6 + $0x88] sm:$0xff]  ;;  %v155_v29 = vunpack.c.l.b16 %v53_v26  ;;  %v156_v30 = vunpack.c.h.b16 %v53_v26  ;;  %v854_v35 = vld [vmem:[#allocation6 + $0x178] sm:$0xff]  ;;  %v831_v37 = vld [vmem:[#allocation6 + $0xc0] sm:$0xff] }
  0x17   :  { %502 = vmatpush.bf16.msra.mxu3 %v836_v11  ;;  %v832_v28 = vld [vmem:[#allocation6 + $0xc8] sm:$0xff]  ;;  %v845_v42 = vld [vmem:[#allocation6 + $0x130] sm:$0xff]  ;;  %v163_v44 = vpack.c.b16 %v157_v38, %v157_v38  ;;  %v164_v45 = vpack.c.b16 %v158_v39, %v158_v39  ;;  %v843_v48 = vld [vmem:[#allocation6 + $0x120] sm:$0xff] }
  0x18   :  { %464 = vmatpush.bf16.msra.mxu0 %v811_v12  ;;  %v161_v40 = vpack.c.b16 %v155_v29, %v155_v29  ;;  %v162_v41 = vpack.c.b16 %v156_v30, %v156_v30  ;;  %v853_v43 = vld [vmem:[#allocation6 + $0x170] sm:$0xff]  ;;  %v844_v46 = vld [vmem:[#allocation6 + $0x128] sm:$0xff]  ;;  %v851_v49 = vld [vmem:[#allocation6 + $0x160] sm:$0xff] }
  0x19   :  { %477 = vmatpush.bf16.msra.mxu1 %v819_v13  ;;  %v852_v47 = vld [vmem:[#allocation6 + $0x168] sm:$0xff]  ;;  %v842_v50 = vld [vmem:[#allocation6 + $0x118] sm:$0xff]  ;;  %v841_v52 = vld [vmem:[#allocation6 + $0x110] sm:$0xff] }
  0x1a   :  { %490 = vmatpush.bf16.msra.mxu2 %v827_v14  ;;  %v850_v51 = vld [vmem:[#allocation6 + $0x158] sm:$0xff]  ;;  %v849_v53 = vld [vmem:[#allocation6 + $0x150] sm:$0xff]  ;;  %v840_v54 = vld [vmem:[#allocation6 + $0x108] sm:$0xff] }
  0x1b   :  { %503 = vmatpush.bf16.msra.mxu3 %v835_v15  ;;  %v848_v55 = vld [vmem:[#allocation6 + $0x148] sm:$0xff]  ;;  %v55_v56 = vld [vmem:[#allocation3 + $0x10] sm:$0xff]  ;;  %v839_v59 = vld [vmem:[#allocation6 + $0x100] sm:$0xff] }
  0x1c   :  { %465 = vmatpush.bf16.msra.mxu0 %v810_v16  ;;  %v159_v57 = vunpack.c.l.b16 %v55_v56  ;;  %v160_v58 = vunpack.c.h.b16 %v55_v56  ;;  %v847_v60 = vld [vmem:[#allocation6 + $0x140] sm:$0xff]  ;;  %v860_v13 = vld [vmem:[%s990_s2] ss:$0 sm:$0xff]  ;;  %s947_s2 = smov [#allocation8]  }
  0x1d   :  { %478 = vmatpush.bf16.msra.mxu1 %v818_v17  ;;  %s598_s27 = sshll.u32 %s947_s2, 4  ;;  %s599_s27 = int_to_ptr.vmem [resolvable:$true] %s598_s27 }
  0x1e   :  { %491 = vmatpush.bf16.msra.mxu2 %v826_v18  ;;  %v165_v61 = vpack.c.b16 %v159_v57, %v159_v57  ;;  %v166_v62 = vpack.c.b16 %v160_v58, %v160_v58  ;;  %v552_v18 = vlaneseq }
  0x1f   :  { %504 = vmatpush.bf16.msra.mxu3 %v834_v19 }
  0x20   :  { %466 = vmatpush.bf16.msra.mxu0 %v809_v20  ;;  %v553_v19 = vand.u32 127, %v552_v18 }
  0x21   :  { %479 = vmatpush.bf16.msra.mxu1 %v817_v21 }
  0x22   :  { %492 = vmatpush.bf16.msra.mxu2 %v825_v22 }
  0x23   :  { %505 = vmatpush.bf16.msra.mxu3 %v833_v23 }
  0x24   :  { %467 = vmatpush.bf16.msra.mxu0 %v808_v24 }
  0x25   :  { %480 = vmatpush.bf16.msra.mxu1 %v816_v25 }
  0x26   :  { %493 = vmatpush.bf16.msra.mxu2 %v824_v27 }
  0x27   :  { %506 = vmatpush.bf16.msra.mxu3 %v832_v28 }
  0x28   :  { %468 = vmatpush.bf16.msra.mxu0 %v807_v32 }
  0x29   :  { %481 = vmatpush.bf16.msra.mxu1 %v815_v33 }
  0x2a   :  { %494 = vmatpush.bf16.msra.mxu2 %v823_v36 }
  0x2b   :  { %507 = vmatpush.bf16.msra.mxu3 %v831_v37  ;;  %469 = vmatmul.bf16.vlgmr.msra.gmra.mxu0 %v161_v40 }
  0x2c   :  { %513 = vmatpush.bf16.msrb.mxu0 %v846_v34  ;;  %482 = vmatmul.bf16.vlgmr.msra.gmra.mxu1 %v162_v41 }
  0x2d   :  { %526 = vmatpush.bf16.msrb.mxu1 %v854_v35  ;;  %495 = vmatmul.bf16.vlgmr.msra.gmra.mxu2 %v163_v44 }
  0x2e   :  { %508 = vmatmul.bf16.vlgmr.msra.gmra.mxu3 %v164_v45 }
  0x30   :  { %514 = vmatpush.bf16.msrb.mxu0 %v845_v42 }
  0x31   :  { %527 = vmatpush.bf16.msrb.mxu1 %v853_v43 }
  0x34   :  { %515 = vmatpush.bf16.msrb.mxu0 %v844_v46 }
  0x35   :  { %528 = vmatpush.bf16.msrb.mxu1 %v852_v47 }
  0x38   :  { %516 = vmatpush.bf16.msrb.mxu0 %v843_v48 }
  0x39   :  { %529 = vmatpush.bf16.msrb.mxu1 %v851_v49 }
  0x3c   :  { %517 = vmatpush.bf16.msrb.mxu0 %v842_v50 }
  0x3d   :  { %530 = vmatpush.bf16.msrb.mxu1 %v850_v51 }
  0x40   :  { %518 = vmatpush.bf16.msrb.mxu0 %v841_v52 }
  0x41   :  { %531 = vmatpush.bf16.msrb.mxu1 %v849_v53 }
  0x44   :  { %519 = vmatpush.bf16.msrb.mxu0 %v840_v54 }
  0x45   :  { %532 = vmatpush.bf16.msrb.mxu1 %v848_v55 }
  0x48   :  { %520 = vmatpush.bf16.msrb.mxu0 %v839_v59 }
  0x49   :  { %533 = vmatpush.bf16.msrb.mxu1 %v847_v60 }
  0x4b   :  { %521 = vmatmul.bf16.vlgmr.msrb.gmra.mxu0 %v165_v61 }
  0x4c   :  { %534 = vmatmul.bf16.vlgmr.msrb.gmra.mxu1 %v166_v62 }
  0xa8   :  { %v470_v63 = vpop.f32.mrf.mxu0 }
  0xa9   :  { %v483_v0 = vpop.f32.mrf.mxu1 }
  0xaa   :  { %v484_v7 = vadd.f32 %v483_v0, %v470_v63 }
  0xb0   :  { %v472_v1 = vpop.f32.mrf.mxu0  ;;  %v496_v3 = vpop.f32.mrf.mxu2 }
  0xb1   :  { %v485_v2 = vpop.f32.mrf.mxu1  ;;  %v509_v4 = vpop.f32.mrf.mxu3  ;;  %v497_v8 = vadd.f32 %v496_v3, %v484_v7 }
  0xb3   :  { %v510_v9 = vadd.f32 %v509_v4, %v497_v8 }
  0xb8   :  { %v498_v5 = vpop.f32.mrf.mxu2 }
  0xb9   :  { %v511_v6 = vpop.f32.mrf.mxu3 }
  0xc8   :  { %v522_v10 = vpop.f32.mrf.mxu0 }
  0xc9   :  { %v535_v11 = vpop.f32.mrf.mxu1  ;;  %v523_v12 = vadd.f32 %v522_v10, %v510_v9 }
  0xcb   :  { %v536_v14 = vadd.f32 %v535_v11, %v523_v12 }
  0xcd   :  { %v549_v15 = vadd.f32 %v860_v13, %v536_v14 }
  0xcf   :  { %550 = vmax.xlane.f32.xlu0 %v549_v15 }
  0xd0   :  { %v524_v16 = vpop.f32.mrf.mxu0 }
  0xd1   :  { %v537_v17 = vpop.f32.mrf.mxu1 }
 0x142   :  { %v551_v20 = vpop.xlane.xlu0 %550 }
 0x143   :  { %vm554_vm0 = vcmp.eq.f32.partialorder %v549_v15, %v551_v20  ;;  %v572_v21 = vsub.f32 %v549_v15, %v551_v20 }
 0x144   :  { %v555_v22 = vsel %vm554_vm0, %v553_v19, 128 }
 0x145   :  { %v573_v23 = vmul.f32 1.442695, %v572_v21  ;;  %v557_v24 = vshra.s32 %v555_v22, 16  ;;  %v556_v27 = vand.u32 65535, %v555_v22 }
 0x147   :  { %861 = vpow2.f32 %v573_v23  ;;  %v559_v25 = vcvt.s32.f32 %v557_v24  ;;  %v558_v29 = vcvt.s32.f32 %v556_v27 }
 0x149   :  { %560 = vmin.xlane.f32.xlu0 %v559_v25 }
 0x14d   :  { %v862_v26 = vpop.eup %861 }
 0x14e   :  { %575 = vadd.xlane.f32.xlu1 %v862_v26 }
 0x1bc   :  { %v561_v28 = vpop.xlane.xlu0 %560 }
 0x1bd   :  { %vm562_vm1 = vcmp.eq.f32.partialorder %v559_v25, %v561_v28  ;;  %v567_v43 = vcvt.f32.s32 %v561_v28 }
 0x1be   :  { %v563_v30 = vsel %vm562_vm1, %v558_v29, inf }
 0x1bf   :  { %564 = vmin.xlane.f32.xlu1 %v563_v30  ;;  %v568_v45 = vshll.u32 %v567_v43, 16 }
 0x1c1   :  { %v576_v31 = vpop.xlane.xlu1 %575 }
 0x1c2   :  { %863 = vrcp.f32 %v576_v31  ;;  %v588_v35 = vand.u32 2147483648, %v576_v31  ;;  %v586_v37 = vand.u32 2147483647, %v576_v31  ;;  %vm582_vm3 = vweird.f32 %v576_v31 }
 0x1c4   :  { %v589_v39 = vor.u32 1.1754944e-38, %v588_v35  ;;  %vm587_vm5 = vcmp.eq.f32.partialorder %v586_v37, 8.507059e+37 }
 0x1c8   :  { %v864_v32 = vpop.eup %863 }
 0x1c9   :  { %v578_v33 = vmul.f32 %v864_v32, %v576_v31  ;;  %vm583_vm2 = vweird.f32 %v864_v32 }
 0x1ca   :  { %vm584_vm4 = vmor %vm582_vm3, %vm583_vm2 }
 0x1cb   :  { %v579_v34 = vsub.f32 1.0, %v578_v33 }
 0x1cd   :  { %v580_v36 = vmul.f32 %v864_v32, %v579_v34 }
 0x1cf   :  { %v581_v38 = vadd.f32 %v864_v32, %v580_v36 }
 0x1d1   :  { %v585_v40 = vsel %vm584_vm4, %v864_v32, %v581_v38 }
 0x1d2   :  { %v590_v41 = vsel %vm587_vm5, %v589_v39, %v585_v40 }
 0x1d3   :  { %v591_v42 = vmul.f32 %v862_v26, %v590_v41 }
 0x1d5   :  { %592 = vst [vmem:[#allocation8] sm:$0xff] %v591_v42 }
 0x1d6   :  { %603 = dma.vmem_to_hbm [thread:$0]  %s599_s27, 128, %s601_s30, [#allocation5]  }
 0x232   :  { %v565_v44 = vpop.xlane.xlu1 %564 }
 0x233   :  { %v566_v46 = vcvt.f32.s32 %v565_v44 }
 0x235   :  { %v569_v47 = vadd.s32 %v568_v45, %v566_v46 }
 0x237   :  { %571 = vst.msk [vmem:[%s992_s4] sm:$0xff] %vm570_vm6, %v569_v47 }
 0x238   :  { %941 = dma.done.wait [#allocation5], 128  }
 0x239   :  { %942 = vsyncadd [#allocation5], 4294967168 }
 0x23a   :  { %612 = vsyncpa [#allocation4], 1 }
 0x23b   :  { %613 = vsyncpa [#allocation7], 1 }
 0x23c   :  { %614 = vsyncpa [#allocation5], 1 }

</bundles_post_ra>
